<compile_context>
chip_gen: v6e
topology: v6e:2x2x1
jax: 0.10.0
libtpu: 0.0.40
codegen_flags: <defaults>
</compile_context>

<pallas_src>
import functools

import jax
import jax.numpy as jnp
import numpy as np
from jax.experimental import pallas as pl
from jax.experimental.pallas import tpu as pltpu


def _swin_attn_kernel(x_ref, wqkv_ref, bqkv_ref, wproj_ref, bproj_ref,
                      bm_ref, o_ref, *, num_heads, mxu_dtype):
    """WB windows per grid step.

    x_ref    : (WB, N, C)     input tokens of WB windows
    wqkv_ref : (C, 3C)        qkv weight (in, out); Q columns pre-scaled
    bqkv_ref : (1, 3C)        qkv bias; Q part pre-scaled
    wproj_ref: (C, C)         output-projection weight (in, out)
    bproj_ref: (1, C)         output-projection bias
    bm_ref   : (WB, H, N, N)  fused relative-position bias + window mask
    o_ref    : (WB, N, C)     output
    """
    WB, N, C = x_ref.shape
    H = num_heads
    hd = C // H

    # --- fused QKV projection: one (WB*N, C) @ (C, 3C) MXU matmul ----------
    x = x_ref[...].reshape(WB * N, C)
    qkv = jnp.dot(x.astype(mxu_dtype), wqkv_ref[...].astype(mxu_dtype),
                  preferred_element_type=jnp.float32)
    qkv = qkv + bqkv_ref[...].astype(jnp.float32)              # (WB*N, 3C)

    # NOTE: for real Swin widths (C >= 128) these lane slices are 128-aligned
    # and free; at the toy C=32 they cost only a tiny relayout.
    q = qkv[:, 0 * C:1 * C]
    k = qkv[:, 1 * C:2 * C]
    v = qkv[:, 2 * C:3 * C]

    if H == 1:                                   # static (trace-time) branch
        qh = q.reshape(WB, N, hd)
        kh = k.reshape(WB, N, hd)
        vh = v.reshape(WB, N, hd)
        bm = bm_ref[...].reshape(WB, N, N).astype(jnp.float32)
    else:
        qh = q.reshape(WB, N, H, hd).transpose(0, 2, 1, 3).reshape(WB * H, N, hd)
        kh = k.reshape(WB, N, H, hd).transpose(0, 2, 1, 3).reshape(WB * H, N, hd)
        vh = v.reshape(WB, N, H, hd).transpose(0, 2, 1, 3).reshape(WB * H, N, hd)
        bm = bm_ref[...].reshape(WB * H, N, N).astype(jnp.float32)

    # --- scores: batched Q @ K^T with no materialized transpose ------------
    s = jnp.einsum('gnd,gmd->gnm', qh.astype(mxu_dtype), kh.astype(mxu_dtype),
                   preferred_element_type=jnp.float32)
    s = s + bm                                    # bias + mask fused on host

    # --- numerically-stable softmax, normalization deferred ----------------
    m = jnp.max(s, axis=-1, keepdims=True)
    p = jnp.exp(s - m)
    denom = jnp.sum(p, axis=-1, keepdims=True)                 # (G, N, 1)

    o = jnp.einsum('gnm,gmd->gnd', p.astype(mxu_dtype), vh.astype(mxu_dtype),
                   preferred_element_type=jnp.float32)
    o = o * pl.reciprocal(denom, approx=False)   # EUP reciprocal, row-wise

    if H == 1:
        attn_out = o.reshape(WB * N, C)
    else:
        attn_out = o.reshape(WB, H, N, hd).transpose(0, 2, 1, 3).reshape(WB * N, C)

    # --- output projection --------------------------------------------------
    y = jnp.dot(attn_out.astype(mxu_dtype), wproj_ref[...].astype(mxu_dtype),
                preferred_element_type=jnp.float32)
    y = y + bproj_ref[...].astype(jnp.float32)
    o_ref[...] = y.reshape(WB, N, C).astype(o_ref.dtype)


def _pick_block_windows(B_, N, target_rows=128):
    """Largest divisor of B_ with WB*N <= target_rows rows per step, but keep
    >= 2 grid steps when possible (v7x has 2 TensorCores sharding the
    'parallel' axis) as long as per-step matmul rows stay >= 64."""
    divisors = [d for d in range(1, B_ + 1) if B_ % d == 0]
    cands = [d for d in divisors if d * N <= target_rows] or [1]
    wb = max(cands)
    if B_ // wb < 2:
        alt = [d for d in cands if B_ // d >= 2 and d * N >= 64]
        if alt:
            wb = max(alt)
    return wb


def swin_attention(x, wqkv, bqkv, wproj, bproj, rel_bias, mask, *,
                   num_heads, scale, block_windows=None,
                   mxu_dtype=jnp.float32):
    """mxu_dtype=jnp.bfloat16 roughly doubles MXU throughput on v6e/v7x
    (accumulation stays f32); default f32 keeps strict 1e-5 parity here."""
    B_, N, C = x.shape
    H = num_heads
    nW = mask.shape[0]

    # Host-side prep (hoisted out of the kernel hot loop):
    #  * fold the softmax scale into the Q columns of the QKV weight/bias
    wqkv = wqkv.at[:, :C].multiply(scale)
    bqkv = bqkv.at[:, :C].multiply(scale)
    #  * fuse relative-position bias + shifted-window mask into one additive
    #    per-window tensor so the kernel does a single add per score.
    bm = rel_bias[None, :, :, :] + mask[:, None, :, :]          # (nW, H, N, N)
    bm = jnp.tile(bm, (B_ // nW, 1, 1, 1)).astype(jnp.float32)  # (B_, H, N, N)
    # TODO(synk): for very large B_ keep bm at (nW, H, N, N) and index it
    # dynamically in-kernel instead of tiling it in HBM.

    WB = block_windows if block_windows is not None else _pick_block_windows(B_, N)
    assert B_ % WB == 0, "block_windows must divide num_windows*batch"
    grid = (B_ // WB,)

    kernel = functools.partial(_swin_attn_kernel, num_heads=H,
                               mxu_dtype=mxu_dtype)
    return pl.pallas_call(
        kernel,
        out_shape=jax.ShapeDtypeStruct((B_, N, C), x.dtype),
        grid_spec=pltpu.PrefetchScalarGridSpec(
            num_scalar_prefetch=0,
            grid=grid,
            in_specs=[
                pl.BlockSpec((WB, N, C), lambda b: (b, 0, 0)),        # x
                pl.BlockSpec((C, 3 * C), lambda b: (0, 0)),           # Wqkv
                pl.BlockSpec((1, 3 * C), lambda b: (0, 0)),           # bqkv
                pl.BlockSpec((C, C), lambda b: (0, 0)),               # Wproj
                pl.BlockSpec((1, C), lambda b: (0, 0)),               # bproj
                pl.BlockSpec((WB, H, N, N), lambda b: (b, 0, 0, 0)),  # bias+mask
            ],
            out_specs=pl.BlockSpec((WB, N, C), lambda b: (b, 0, 0)),
        ),
        # TODO(synk): set vmem_limit_bytes when scaling WB / real Swin C so
        # the double-buffered working set fits v7x's 64 MiB VMEM per core.
        compiler_params=pltpu.CompilerParams(
            dimension_semantics=("parallel",)),
    )(x, wqkv, bqkv, wproj, bproj, bm)


def relative_position_index(window_size):
    """Same construction as in the PyTorch __init__ (torch.meshgrid is 'ij')."""
    Wh, Ww = window_size
    coords = np.stack(np.meshgrid(np.arange(Wh), np.arange(Ww), indexing="ij"))
    coords_flatten = coords.reshape(2, -1)                         # (2, N)
    rel = coords_flatten[:, :, None] - coords_flatten[:, None, :]  # (2, N, N)
    rel = rel.transpose(1, 2, 0).copy()                            # (N, N, 2)
    rel[:, :, 0] += Wh - 1
    rel[:, :, 1] += Ww - 1
    rel[:, :, 0] *= 2 * Ww - 1
    return rel.sum(-1)                                             # (N, N)


if __name__ == "__main__":
    # Small shapes consistent with the module: windows of 4x4 tokens, dim=32.
    B, nW = 2, 4
    window_size = (4, 4)
    dim = 32
    heads = 1                      # module-level num_heads = 1
    Wh, Ww = window_size
    N = Wh * Ww
    B_ = B * nW
    head_dim = dim // heads
    scale = head_dim ** (-0.5)

    key = jax.random.PRNGKey(0)
    ks = jax.random.split(key, 8)

    x = jax.random.normal(ks[0], (B_, N, dim), dtype=jnp.float32)
    # nn.Linear weights stored as (in, out); equivalent to torch's W.T.
    wqkv = 0.05 * jax.random.normal(ks[1], (dim, 3 * dim), dtype=jnp.float32)
    bqkv = 0.02 * jax.random.normal(ks[2], (1, 3 * dim), dtype=jnp.float32)
    wproj = 0.05 * jax.random.normal(ks[3], (dim, dim), dtype=jnp.float32)
    bproj = 0.02 * jax.random.normal(ks[4], (1, dim), dtype=jnp.float32)
    # relative_position_bias_table: trunc_normal(std=0.02)
    table = 0.02 * jax.random.truncated_normal(
        ks[5], -2.0, 2.0, ((2 * Wh - 1) * (2 * Ww - 1), heads)).astype(jnp.float32)

    rpi = relative_position_index(window_size)                     # (N, N) int
    rel_bias = table[rpi.reshape(-1)].reshape(N, N, heads)
    rel_bias = jnp.transpose(rel_bias, (2, 0, 1)).astype(jnp.float32)  # (H,N,N)

    # Shifted-window style additive mask (0 / -100), shape (nW, N, N).
    blocked = jax.random.bernoulli(ks[6], 0.2, (nW, N, N))
    mask = jnp.where(blocked, -100.0, 0.0).astype(jnp.float32)

    out = swin_attention(x, wqkv, bqkv, wproj, bproj, rel_bias, mask,
                         num_heads=heads, scale=scale)
    out = jax.block_until_ready(out)

    # Pure-JAX reference replicating the PyTorch forward exactly.
    def ref(x):
        qkv = x @ wqkv + bqkv[0]
        qkv = qkv.reshape(B_, N, 3, heads, head_dim).transpose(2, 0, 3, 1, 4)
        q, k, v = qkv[0] * scale, qkv[1], qkv[2]
        attn = jnp.einsum("bhnd,bhmd->bhnm", q, k)
        attn = attn + rel_bias[None]
        attn = attn.reshape(B_ // nW, nW, heads, N, N) + mask[None, :, None]
        attn = attn.reshape(B_, heads, N, N)
        attn = jax.nn.softmax(attn, axis=-1)
        y = jnp.einsum("bhnm,bhmd->bhnd", attn, v)
        y = y.transpose(0, 2, 1, 3).reshape(B_, N, dim)
        return y @ wproj + bproj[0]

    np.testing.assert_allclose(np.asarray(out), np.asarray(ref(x)),
                               rtol=1e-5, atol=1e-5)
    print("KERNEL_OK")
</pallas_src>

<mosaic_0001>
module attributes {stable_mosaic.version = 11 : i64} {
  func.func @_swin_attn_kernel(%arg0: i32, %arg1: memref<4x16x32xf32, #tpu.memory_space<vmem>>, %arg2: memref<32x96xf32, #tpu.memory_space<vmem>>, %arg3: memref<1x96xf32, #tpu.memory_space<vmem>>, %arg4: memref<32x32xf32, #tpu.memory_space<vmem>>, %arg5: memref<1x32xf32, #tpu.memory_space<vmem>>, %arg6: memref<4x1x16x16xf32, #tpu.memory_space<vmem>>, %arg7: memref<4x16x32xf32, #tpu.memory_space<vmem>>) attributes {dimension_semantics = [#tpu.dimension_semantics<parallel>], iteration_bounds = array<i64: 2>, scalar_prefetch = 0 : i64, scratch_operands = 0 : i64, tpu.core_type = #tpu.core_type<tc>, window_params = [{transform_indices = @transform_0, window_bounds = array<i64: 4, 16, 32>}, {pipeline_mode = #tpu.pipeline_mode<synchronous>, transform_indices = @transform_1, window_bounds = array<i64: 32, 96>}, {pipeline_mode = #tpu.pipeline_mode<synchronous>, transform_indices = @transform_2, window_bounds = array<i64: 1, 96>}, {pipeline_mode = #tpu.pipeline_mode<synchronous>, transform_indices = @transform_3, window_bounds = array<i64: 32, 32>}, {pipeline_mode = #tpu.pipeline_mode<synchronous>, transform_indices = @transform_4, window_bounds = array<i64: 1, 32>}, {transform_indices = @transform_5, window_bounds = array<i64: 4, 1, 16, 16>}, {transform_indices = @transform_6, window_bounds = array<i64: 4, 16, 32>}]} {
    %c0 = arith.constant 0 : index
    %c0_0 = arith.constant 0 : index
    %c0_1 = arith.constant 0 : index
    %0 = vector.load %arg1[%c0, %c0_0, %c0_1] : memref<4x16x32xf32, #tpu.memory_space<vmem>>, vector<4x16x32xf32>
    %1 = vector.shape_cast %0 : vector<4x16x32xf32> to vector<64x32xf32>
    %c0_2 = arith.constant 0 : index
    %c0_3 = arith.constant 0 : index
    %2 = vector.load %arg2[%c0_2, %c0_3] : memref<32x96xf32, #tpu.memory_space<vmem>>, vector<32x96xf32>
    %cst = arith.constant dense<0.000000e+00> : vector<64x96xf32>
    %3 = tpu.matmul %1, %2, %cst {dimension_numbers = #tpu.dot_dimension_numbers<[1], [0], [0], [1], [0, 0, 1, 1], [], []>} : vector<64x32xf32>, vector<32x96xf32>, vector<64x96xf32> -> vector<64x96xf32>
    %c0_4 = arith.constant 0 : index
    %c0_5 = arith.constant 0 : index
    %4 = vector.load %arg3[%c0_4, %c0_5] : memref<1x96xf32, #tpu.memory_space<vmem>>, vector<1x96xf32>
    %5 = vector.broadcast %4 : vector<1x96xf32> to vector<64x96xf32>
    %6 = arith.addf %3, %5 : vector<64x96xf32>
    %7 = vector.extract_strided_slice %6 {offsets = [0, 0], sizes = [64, 32], strides = [1, 1]} : vector<64x96xf32> to vector<64x32xf32>
    %8 = vector.extract_strided_slice %6 {offsets = [0, 32], sizes = [64, 32], strides = [1, 1]} : vector<64x96xf32> to vector<64x32xf32>
    %9 = vector.extract_strided_slice %6 {offsets = [0, 64], sizes = [64, 32], strides = [1, 1]} : vector<64x96xf32> to vector<64x32xf32>
    %10 = vector.shape_cast %7 : vector<64x32xf32> to vector<4x16x32xf32>
    %11 = vector.shape_cast %8 : vector<64x32xf32> to vector<4x16x32xf32>
    %12 = vector.shape_cast %9 : vector<64x32xf32> to vector<4x16x32xf32>
    %c0_6 = arith.constant 0 : index
    %c0_7 = arith.constant 0 : index
    %c0_8 = arith.constant 0 : index
    %c0_9 = arith.constant 0 : index
    %13 = vector.load %arg6[%c0_6, %c0_7, %c0_8, %c0_9] : memref<4x1x16x16xf32, #tpu.memory_space<vmem>>, vector<4x1x16x16xf32>
    %14 = vector.shape_cast %13 : vector<4x1x16x16xf32> to vector<4x16x16xf32>
    "tpu.trace_start"() <{level = 10 : i32, message = "gnd,gmd->gnm"}> : () -> ()
    %cst_10 = arith.constant dense<0.000000e+00> : vector<4x16x16xf32>
    %15 = tpu.matmul %10, %11, %cst_10 {dimension_numbers = #tpu.dot_dimension_numbers<[2], [2], [1], [1], [0, 0, 0, 1, 1, 1], [0], [0]>} : vector<4x16x32xf32>, vector<4x16x32xf32>, vector<4x16x16xf32> -> vector<4x16x16xf32>
    "tpu.trace_stop"() : () -> ()
    %16 = arith.addf %15, %14 : vector<4x16x16xf32>
    %cst_11 = arith.constant dense<0xFF800000> : vector<4x16xf32>
    %17 = vector.multi_reduction <maximumf>, %16, %cst_11 [2] : vector<4x16x16xf32> to vector<4x16xf32>
    %18 = vector.shape_cast %17 : vector<4x16xf32> to vector<4x16x1xf32>
    %19 = vector.broadcast %18 : vector<4x16x1xf32> to vector<4x16x16xf32>
    %20 = arith.subf %16, %19 : vector<4x16x16xf32>
    %21 = math.exp %20 : vector<4x16x16xf32>
    %cst_12 = arith.constant dense<0.000000e+00> : vector<4x16xf32>
    %22 = vector.multi_reduction <add>, %21, %cst_12 [2] : vector<4x16x16xf32> to vector<4x16xf32>
    %23 = vector.shape_cast %22 : vector<4x16xf32> to vector<4x16x1xf32>
    "tpu.trace_start"() <{level = 10 : i32, message = "gnm,gmd->gnd"}> : () -> ()
    %cst_13 = arith.constant dense<0.000000e+00> : vector<4x16x32xf32>
    %24 = tpu.matmul %21, %12, %cst_13 {dimension_numbers = #tpu.dot_dimension_numbers<[2], [1], [1], [2], [0, 0, 0, 1, 1, 2], [0], [0]>} : vector<4x16x16xf32>, vector<4x16x32xf32>, vector<4x16x32xf32> -> vector<4x16x32xf32>
    "tpu.trace_stop"() : () -> ()
    %25 = tpu.reciprocal %23 : vector<4x16x1xf32> -> vector<4x16x1xf32>
    %26 = vector.broadcast %25 : vector<4x16x1xf32> to vector<4x16x32xf32>
    %27 = arith.mulf %24, %26 : vector<4x16x32xf32>
    %28 = vector.shape_cast %27 : vector<4x16x32xf32> to vector<64x32xf32>
    %c0_14 = arith.constant 0 : index
    %c0_15 = arith.constant 0 : index
    %29 = vector.load %arg4[%c0_14, %c0_15] : memref<32x32xf32, #tpu.memory_space<vmem>>, vector<32x32xf32>
    %cst_16 = arith.constant dense<0.000000e+00> : vector<64x32xf32>
    %30 = tpu.matmul %28, %29, %cst_16 {dimension_numbers = #tpu.dot_dimension_numbers<[1], [0], [0], [1], [0, 0, 1, 1], [], []>} : vector<64x32xf32>, vector<32x32xf32>, vector<64x32xf32> -> vector<64x32xf32>
    %c0_17 = arith.constant 0 : index
    %c0_18 = arith.constant 0 : index
    %31 = vector.load %arg5[%c0_17, %c0_18] : memref<1x32xf32, #tpu.memory_space<vmem>>, vector<1x32xf32>
    %32 = vector.broadcast %31 : vector<1x32xf32> to vector<64x32xf32>
    %33 = arith.addf %30, %32 : vector<64x32xf32>
    %34 = vector.shape_cast %33 : vector<64x32xf32> to vector<4x16x32xf32>
    %c0_19 = arith.constant 0 : index
    %c0_20 = arith.constant 0 : index
    %c0_21 = arith.constant 0 : index
    %35 = vector.load %arg7[%c0_19, %c0_20, %c0_21] : memref<4x16x32xf32, #tpu.memory_space<vmem>>, vector<4x16x32xf32>
    tpu.vector_store %arg7[%c0_19, %c0_20, %c0_21], %34 {strides = array<i32>} : memref<4x16x32xf32, #tpu.memory_space<vmem>>, vector<4x16x32xf32>,
    return
  }
  func.func @transform_0(%arg0: i32) -> (i32, i32, i32) {
    %c0_i32 = arith.constant 0 : i32
    %c0_i32_0 = arith.constant 0 : i32
    %c0_i32_1 = arith.constant 0 : i32
    return %arg0, %c0_i32, %c0_i32_0 : i32, i32, i32
  }
  func.func @transform_1(%arg0: i32) -> (i32, i32) {
    %c0_i32 = arith.constant 0 : i32
    %c0_i32_0 = arith.constant 0 : i32
    %c0_i32_1 = arith.constant 0 : i32
    return %c0_i32, %c0_i32_0 : i32, i32
  }
  func.func @transform_2(%arg0: i32) -> (i32, i32) {
    %c0_i32 = arith.constant 0 : i32
    %c0_i32_0 = arith.constant 0 : i32
    %c0_i32_1 = arith.constant 0 : i32
    return %c0_i32, %c0_i32_0 : i32, i32
  }
  func.func @transform_3(%arg0: i32) -> (i32, i32) {
    %c0_i32 = arith.constant 0 : i32
    %c0_i32_0 = arith.constant 0 : i32
    %c0_i32_1 = arith.constant 0 : i32
    return %c0_i32, %c0_i32_0 : i32, i32
  }
  func.func @transform_4(%arg0: i32) -> (i32, i32) {
    %c0_i32 = arith.constant 0 : i32
    %c0_i32_0 = arith.constant 0 : i32
    %c0_i32_1 = arith.constant 0 : i32
    return %c0_i32, %c0_i32_0 : i32, i32
  }
  func.func @transform_5(%arg0: i32) -> (i32, i32, i32, i32) {
    %c0_i32 = arith.constant 0 : i32
    %c0_i32_0 = arith.constant 0 : i32
    %c0_i32_1 = arith.constant 0 : i32
    %c0_i32_2 = arith.constant 0 : i32
    return %arg0, %c0_i32, %c0_i32_0, %c0_i32_1 : i32, i32, i32, i32
  }
  func.func @transform_6(%arg0: i32) -> (i32, i32, i32) {
    %c0_i32 = arith.constant 0 : i32
    %c0_i32_0 = arith.constant 0 : i32
    %c0_i32_1 = arith.constant 0 : i32
    return %arg0, %c0_i32, %c0_i32_0 : i32, i32, i32
  }
}

</mosaic_0001>

<bundles_post_ra>
// kernel: tpu_custom_call.1
= control target key start
LH: loop header
LB: loop body
LE: loop exit
PB: predicated region body
PF: predicated region fallthrough
CT: control target
= control target key end

     0   :  { %s2520_s0 = inlined_call_operand.hbm [shape: f32[8,16,32], index: 0, kind: input, shape index: {}]   ;;  %s2521_s1 = inlined_call_operand.hbm [shape: f32[32,96], index: 1, kind: input, shape index: {}]   ;;  %s2522_s2 = inlined_call_operand.vmem [shape: f32[1,96], index: 2, kind: input, shape index: {}]   ;;  %s2523_s3 = inlined_call_operand.hbm [shape: f32[32,32], index: 3, kind: input, shape index: {}]   ;;  %s2524_s4 = inlined_call_operand.vmem [shape: f32[1,32], index: 4, kind: input, shape index: {}]   ;;  %s2525_s5 = inlined_call_operand.hbm [shape: f32[8,1,16,16], index: 5, kind: input, shape index: {}]   ;;  %s2526_s6 = inlined_call_operand.hbm [shape: f32[8,16,32], index: 6, kind: output, shape index: {}]  }
   0x1   :  { %2536 = sst [smem:[#allocation17_spill]] %s2520_s0 }
   0x2   :  { %2537 = sst [smem:[#allocation18_spill]] %s2521_s1 }
   0x3   :  { %2538 = sst [smem:[#allocation19_spill]] %s2523_s3 }
   0x4   :  { %11 = vsyncpa [#allocation3], 0 }
   0x5   :  { %13 = vsyncpa [#allocation3 + $0x1], 0 }
   0x6   :  { %14 = vsyncpa [#allocation6], 0 }
   0x7   :  { %15 = vsyncpa [#allocation9], 0 }
   0x8   :  { %17 = vsyncpa [#allocation9 + $0x1], 0 }
   0x9   :  { %18 = vsyncpa [#allocation4], 0 }
   0xa   :  { %20 = vsyncpa [#allocation4 + $0x1], 0  ;;  %s2143_s21 = smov 0   ;;  %s2145_s22 = smov 0  }
   0xb   :  { %s2147_s23 = smov 0   ;;  %s2149_s24 = smov 0  }
   0xc LB: > { %2539 = sst [smem:[#allocation15_spill]] %s2091_s23  ;;  %s2164_s25 = sadd.s32 4294967295, %s2095_s24   ;;  %s2095_s24 = sphi %s2149_s24, %s2563_s24   ;;  %s2091_s23 = sphi %s2147_s23, %s2560_s23   ;;  %s2087_s22 = sphi %s2145_s22, %s2562_s22   ;;  %s2083_s21 = sphi %s2143_s21, %s2561_s21  }
   0xd   : > { %s1572_s26 = sadd.s32 4294967294, %s2095_s24   ;;  %p46_p0 = scmp.ne.s32.totalorder %s2087_s22, %s2083_s21 }
   0xe   : > { %p2532_p1 = scmp.eq.s32.totalorder %s2164_s25, 0  ;;  %p180_p2 = scmp.eq.s32.totalorder %s2164_s25, 1 }
   0xf   : > { %p186_p3 = scmp.eq.s32.totalorder %s1572_s26, 1  ;;  %p1573_p5 = scmp.ge.s32.totalorder %s2095_s24, 1 }
  0x10   : > { %p2173_p4 = por %p2532_p1, %p46_p0  ;;  %p193_p7 = scmp.lt.s32.totalorder %s2095_s24, 3 }
  0x11   : > { %p2178_p6 = por %p186_p3, %p46_p0  ;;  %s2097_s30 = smov [#allocation5]  }
  0x12   : > { %s2540_s27 = scalar_select %p2173_p4, 1, 0 }
  0x13   : > { %s2541_s28 = scalar_select %p2178_p6, 1, 0 }
  0x14   : > { %p2183_p8 = pnand %p1573_p5, %p193_p7  ;;  %s205_s7 = sshll.u32 %s2097_s30, 4  ;;  %s206_s7 = int_to_ptr.vmem [resolvable:$true] %s205_s7 }
  0x15   : > { %s2098_s9 = smov [#allocation7]   ;;  %s1926_s11 = scalar_lea.vmem %s206_s7, 512 }
  0x16   : > { %p1819_p9 = pneg %p2183_p8  ;;  %s221_s10 = sshll.u32 %s2098_s9, 4  ;;  %s222_s10 = int_to_ptr.vmem [resolvable:$true] %s221_s10 }
  0x17   : > { %p1927_p13 = scmp.ne.s32.totalorder %s206_s7, %s1926_s11  ;;  %p1934_p5 = scmp.lt.s32.totalorder %s206_s7, %s206_s7 }
  0x18   : > { %p2192_p11 = pnand %p1819_p9, %p2532_p1  ;;  %p1935_p7 = scmp.lt.s32.totalorder %s1926_s11, %s1926_s11 }
  0x1a   : > { %p1917_p12 = pneg %p2192_p11  ;;  %p1936_p10 = por %p1935_p7, %p1934_p5 }
  0x1c   : > { %p1929_p0 = pnand %p1927_p13, %p1917_p12 }
  0x1e   : > { %p1930_p3 = pneg %p1929_p0 }
  0x20   : > { %p1937_p9 = pnand %p1936_p10, %p1930_p3 }
  0x22   : > { %1940 = shalt.err (!%p1937_p9)
}
  0x23   : > { %s2527_s12 = smov 128   ;;  %s2530_s13 = smov 8  }
  0x24   : > { %s2544_s1 = sld [smem:[#allocation18_spill]]  ;;  %s1952_s16 = scalar_lea.vmem %s222_s10, 512 }
  0x25   : > { %p1953_p13 = scmp.ne.s32.totalorder %s222_s10, %s1952_s16  ;;  %p1960_p10 = scmp.lt.s32.totalorder %s222_s10, %s222_s10 }
  0x26   : > { %p1961_p3 = scmp.lt.s32.totalorder %s1952_s16, %s1952_s16 }
  0x27   : > { %p1955_p0 = pnand %p1953_p13, %p1917_p12 }
  0x28   : > { %p1962_p7 = por %p1961_p3, %p1960_p10 }
  0x29   : > { %p1956_p5 = pneg %p1955_p0 }
  0x2a   : > { %1822 = dma.hbm_to_vmem [thread:$0]  (!%p2192_p11), %s2544_s1, 512, %s206_s7, [#allocation6], %s2527_s12, %s2527_s12, %s2530_s13  }
  0x2b   : > { %p1963_p9 = pnand %p1962_p7, %p1956_p5 }
  0x2d   : > { %1966 = shalt.err (!%p1963_p9)
}
  0x2e   : > { %s2545_s3 = sld [smem:[#allocation19_spill]]  ;;  %s2221_s19 = sadd.s32 1, %s2095_s24  }
  0x2f   : > { %s33_s20 = sadd.s32 1, %s2091_s23  ;;  %s30_s26 = ssub.s32 %s2095_s24, %s2221_s19 }
  0x30   : > { %p40_p12 = scmp.ne.s32.totalorder %s2091_s23, %s2087_s22  ;;  %p31_p13 = scmp.eq.s32.totalorder %s30_s26, 0 }
  0x31   : > { %p41_p0 = scmp.eq.s32.totalorder %s2095_s24, 0  ;;  %p1839_p10 = scmp.lt.s32.totalorder %s2095_s24, 2 }
  0x32   : > { %p2231_p5 = por %p180_p2, %p40_p12  ;;  %s2240_s8 = sand.u32 1, %s2091_s23  }
  0x33   : > { %s2237_s7 = scalar_select %p31_p13, %s2091_s23, %s33_s20  }
  0x34   : > { %1825 = dma.hbm_to_vmem [thread:$0]  (!%p2192_p11), %s2545_s3, 512, %s222_s10, [#allocation6], %s2527_s12, %s2527_s12, %s2530_s13  }
  0x35   : > { %s2546_s30 = scalar_select %p2231_p5, 1, 0 }
  0x36   : > { %2547 = sst [smem:[#allocation16_spill]] %s2237_s7  ;;  %p42_p3 = por %p41_p0, %p40_p12 }
  0x37   : > { %s2529_s9 = sshll.u32 %s2240_s8, 6  ;;  %s1640_s10 = sshll.u32 %s2095_s24, 10 }
  0x38   : > { %s2548_s0 = sld [smem:[#allocation17_spill]]  ;;  %s242_s16 = scalar_lea.vmem [#allocation2], %s2529_s9 }
  0x39   : > { %s250_s17 = sshll.u32 %s242_s16, 4  ;;  %p2253_p2 = pnand %p1839_p10, %p42_p3  ;;  %s2251_s17 = int_to_ptr.vmem [resolvable:$true] %s250_s17 }
  0x3a   : > { %s2260_s11 = scalar_lea.hbm %s2525_s5, %s1640_s10  ;;  %s239_s14 = scalar_lea.sflag [#allocation3], %s2240_s8 }
  0x3b   : > { %p1969_p7 = pneg %p2253_p2 }
  0x3e   : > { %s2247_s15 = scalar_lea.hbm %s2548_s0, %s1640_s10  ;;  %s1972_s13 = scalar_lea.hbm %s2548_s0, 2048 }
  0x3f   : > { %s1967_s12 = scalar_lea.hbm %s2247_s15, 1024  ;;  %p1973_p13 = scmp.lt.s32.totalorder %s2247_s15, %s2548_s0 }
  0x40   : > { %p1968_p11 = scmp.ne.s32.totalorder %s2247_s15, %s1967_s12  ;;  %p1974_p0 = scmp.lt.s32.totalorder %s1972_s13, %s1967_s12 }
  0x42   : > { %p1970_p9 = pnand %p1969_p7, %p1968_p11  ;;  %p1975_p10 = por %p1974_p0, %p1973_p13 }
  0x44   : > { %p1971_p12 = pneg %p1970_p9 }
  0x46   : > { %p1976_p3 = pnand %p1975_p10, %p1971_p12 }
  0x48   : > { %1979 = shalt.err (!%p1976_p3)
}
  0x49   : > { %s1980_s10 = scalar_lea.vmem %s2251_s17, 1024  ;;  %s2101_s9 = smov [#allocation2]  }
  0x4a   : > { %p1981_p1 = scmp.ne.s32.totalorder %s2251_s17, %s1980_s10  ;;  %s1985_s20 = sshll.u32 %s2101_s9, 4  ;;  %s1986_s20 = int_to_ptr.vmem [resolvable:$false] %s1985_s20 }
  0x4b   : > { %s1987_s26 = scalar_lea.vmem %s1986_s20, 2048  ;;  %p1988_p6 = scmp.lt.s32.totalorder %s2251_s17, %s1986_s20 }
  0x4c   : > { %p1983_p11 = pnand %p1981_p1, %p1969_p7  ;;  %p1989_p5 = scmp.lt.s32.totalorder %s1987_s26, %s1980_s10 }
  0x4e   : > { %p1984_p9 = pneg %p1983_p11  ;;  %p1990_p4 = por %p1989_p5, %p1988_p6 }
  0x50   : > { %p1991_p13 = pnand %p1990_p4, %p1984_p9 }
  0x52   : > { %1994 = shalt.err (!%p1991_p13)
}
  0x53   : > { %s2550_s1 = smov 8   ;;  %s2551_s3 = smov 128  }
  0x54   : > { %1829 = dma.hbm_to_vmem [thread:$0]  (!%p2253_p2), %s2247_s15, 1024, %s2251_s17, %s239_s14, %s2551_s3, %s2551_s3, %s2550_s1  }
  0x55   : > { %s2552_s12 = sshll.u32 %s2240_s8, 6  ;;  %s261_s10 = scalar_lea.sflag [#allocation9], %s2240_s8 }
  0x56   : > { %s264_s13 = scalar_lea.vmem [#allocation8], %s2552_s12  ;;  %s1995_s9 = scalar_lea.hbm %s2260_s11, 1024 }
  0x57   : > { %s272_s16 = sshll.u32 %s264_s13, 4  ;;  %p1996_p1 = scmp.ne.s32.totalorder %s2260_s11, %s1995_s9  ;;  %s2294_s16 = int_to_ptr.vmem [resolvable:$true] %s272_s16 }
  0x58   : > { %s2000_s0 = scalar_lea.hbm %s2525_s5, 2048  ;;  %p2001_p5 = scmp.lt.s32.totalorder %s2260_s11, %s2525_s5 }
  0x59   : > { %p1998_p4 = pnand %p1996_p1, %p1969_p7  ;;  %p2002_p12 = scmp.lt.s32.totalorder %s2000_s0, %s1995_s9 }
  0x5b   : > { %p1999_p6 = pneg %p1998_p4  ;;  %p2003_p0 = por %p2002_p12, %p2001_p5 }
  0x5d   : > { %p2004_p10 = pnand %p2003_p0, %p1999_p6 }
  0x5f   : > { %2007 = shalt.err (!%p2004_p10)
}
  0x60   : > { %s2008_s8 = scalar_lea.vmem %s2294_s16, 1024  ;;  %s2102_s15 = smov [#allocation8]  }
  0x61   : > { %p2009_p3 = scmp.ne.s32.totalorder %s2294_s16, %s2008_s8  ;;  %s2013_s17 = sshll.u32 %s2102_s15, 4  ;;  %s2014_s17 = int_to_ptr.vmem [resolvable:$false] %s2013_s17 }
  0x62   : > { %s2015_s14 = scalar_lea.vmem %s2014_s17, 2048  ;;  %p2016_p13 = scmp.lt.s32.totalorder %s2294_s16, %s2014_s17 }
  0x63   : > { %p2011_p11 = pnand %p2009_p3, %p1969_p7  ;;  %p2017_p1 = scmp.lt.s32.totalorder %s2015_s14, %s2008_s8 }
  0x65   : > { %p2012_p9 = pneg %p2011_p11  ;;  %p2018_p4 = por %p2017_p1, %p2016_p13 }
  0x67   : > { %p2019_p5 = pnand %p2018_p4, %p2012_p9 }
  0x69   : > { %2022 = shalt.err (!%p2019_p5)
}
  0x6a   : > { %1832 = dma.hbm_to_vmem [thread:$0]  (!%p2253_p2), %s2260_s11, 1024, %s2294_s16, %s261_s10, %s2551_s3, %s2551_s3, %s2550_s1  }
  0x6b   : > { %284 = sbr.rel (%p2183_p8) target bundleno = 1237 (0x4d5), region = 44  ;;  %s2325_s0 = sand.u32 (!%p2183_p8), 1, %s2087_s22  }
  0x6c   : > { %s2328_s23 = sshll.u32 (!%p2183_p8), %s2325_s0, 6  ;;  %s287_s7 = scalar_lea.sflag (!%p2183_p8), [#allocation3], %s2325_s0 }
  0x6d   : > { %s2332_s18 = scalar_lea.vmem (!%p2183_p8), [#allocation2], %s2328_s23  ;;  %p2553_p7 = scmp.ne.s32.totalorder (!%p2183_p8), %s2540_s27, 0 }
  0x70   : > { %2066 = dma.done.wait (%p2553_p7), %s287_s7, 1024  }
  0x71   : > { %2068 = vsyncadd (%p2553_p7), %s287_s7, 4294966272  ;;  %p2554_p2 = scmp.eq.s32.totalorder %s2164_s25, 0 }
  0x73   : > { %2070 = dma.done.wait (%p2554_p2), [#allocation6], 1024   ;;  %p2555_p8 = pmov %p2554_p2 }
  0x74   : > { %s304_s29 = scalar_lea.sflag [#allocation9], %s2325_s0  ;;  %s2344_s11 = scalar_lea.vmem [#allocation8], %s2328_s23 }
  0x75   : > { %2072 = vsyncadd (%p2555_p8), [#allocation6], 4294966272 }
  0x76   : > { %2074 = dma.done.wait (%p2553_p7), %s304_s29, 1024  }
  0x77   : > { %2076 = vsyncadd (%p2553_p7), %s304_s29, 4294966272  ;;  %v355_v0 = vld [vmem:[#allocation5 + $0x18] sm:$0xff]  ;;  %v354_v1 = vld [vmem:[#allocation5 + $0x10] sm:$0xff]  ;;  %vm363_vm0 = vcmask 261120   ;;  %s2103_s3 = smov 96   ;;  %s2104_s12 = smov 64  }
  0x78   : > { %1701 = vmatprep.subr.mxu0 %v355_v0  ;;  %1797 = vmatprep.subr.mxu1 %v355_v0  ;;  %v344_v2 = vld [vmem:[%s2332_s18] sm:$0xff]  ;;  %v353_v3 = vld [vmem:[#allocation5 + $0x8] sm:$0xff]  ;;  %v346_v6 = vld [vmem:[%s2332_s18 + $0x10] sm:$0xff]  ;;  %vm857_vm1 = vcmask 130048   ;;  %s340_s10 = scalar_lea.vmem [#allocation10], %s2328_s23  ;;  %s1644_s9 = sshll.u32 %s2164_s25, 10 }
  0x79   : > { %1702 = vmatpush3.msra.mxu0 %v355_v0  ;;  %1801 = vmatpush3.msra.mxu1 %v355_v0  ;;  %v352_v4 = vld [vmem:[#allocation5] sm:$0xff]  ;;  %v345_v5 = vld [vmem:[%s2332_s18 + $0x8] sm:$0xff]  ;;  %v350_v9 = vld [vmem:[%s2332_s18 + $0x30] sm:$0xff]  ;;  %s1457_s20 = sshll.u32 %s340_s10, 4  ;;  %s2473_s15 = scalar_lea.hbm %s2526_s6, %s1644_s9  ;;  %s2475_s20 = int_to_ptr.vmem [resolvable:$true] %s1457_s20 }
  0x7a   : > { %1703 = vmatprep.subr.mxu0 %v354_v1  ;;  %1709 = vmatprep.mubr.msk.f32.mxu0 %vm363_vm0, %v344_v2  ;;  %v348_v7 = vld [vmem:[%s2332_s18 + $0x20] sm:$0xff]  ;;  %v349_v8 = vld [vmem:[%s2332_s18 + $0x28] sm:$0xff]  ;;  %v347_v10 = vld [vmem:[%s2332_s18 + $0x18] sm:$0xff]  ;;  %s1443_s25 = scalar_lea.sflag [#allocation4], %s2325_s0  ;;  %s2023_s17 = scalar_lea.vmem %s2475_s20, 1024 }
  0x7b   : > { %1704 = vmatpush3.msra.mxu0 %v354_v1  ;;  %1798 = vmatprep.subr.mxu1 %v354_v1  ;;  %v351_v11 = vld [vmem:[%s2332_s18 + $0x38] sm:$0xff]  ;;  %v1591_v12 = vld [vmem:[%s2522_s2] ss:$0 sm:$0xff]  ;;  %v494_v43 = vld [vmem:[%s2344_s11 + $0x8] sm:$0xff]  ;;  %p2024_p6 = scmp.ne.s32.totalorder %s2475_s20, %s2023_s17  ;;  %p2556_p12 = scmp.ne.s32.totalorder %s2546_s30, 0 }
  0x7c   : > { %1705 = vmatprep.subr.mxu0 %v353_v3  ;;  %1802 = vmatpush3.msra.mxu1 %v354_v1  ;;  %v498_v47 = vld [vmem:[%s2344_s11 + $0x28] sm:$0xff]  ;;  %v493_v49 = vld [vmem:[%s2344_s11] sm:$0xff]  ;;  %v496_v58 = vld [vmem:[%s2344_s11 + $0x18] sm:$0xff]  ;;  %s2105_s14 = smov [#allocation10]  }
  0x7d   : > { %1706 = vmatpush3.msra.mxu0 %v353_v3  ;;  %1799 = vmatprep.subr.mxu1 %v353_v3  ;;  %v497_v51 = vld [vmem:[%s2344_s11 + $0x20] sm:$0xff]  ;;  %v499_v0 = vld [vmem:[%s2344_s11 + $0x30] sm:$0xff]  ;;  %p2025_p0 = pnand %p2024_p6, %p2556_p12  ;;  %s2027_s23 = sshll.u32 %s2105_s14, 4  ;;  %s2028_s23 = int_to_ptr.vmem [resolvable:$false] %s2027_s23 }
  0x7e   : > { %1707 = vmatprep.subr.mxu0 %v352_v4  ;;  %1803 = vmatpush3.msra.mxu1 %v353_v3  ;;  %v495_v1 = vld [vmem:[%s2344_s11 + $0x10] sm:$0xff]  ;;  %s2029_s7 = scalar_lea.vmem %s2028_s23, 2048  ;;  %p2030_p3 = scmp.lt.s32.totalorder %s2475_s20, %s2028_s23 }
  0x7f   : > { %1708 = vmatpush3.msra.mxu0 %v352_v4  ;;  %1800 = vmatprep.subr.mxu1 %v352_v4  ;;  %p2026_p10 = pneg %p2025_p0  ;;  %p2031_p11 = scmp.lt.s32.totalorder %s2029_s7, %s2023_s17 }
  0x80   : > { %1710 = vmatmul.mubr.msk.f32.vlgmr.msra.gmra.mxu0 %vm363_vm0, %v345_v5  ;;  %1804 = vmatpush3.msra.mxu1 %v352_v4 }
  0x81   : > { %1712 = vmatprep.mubr.msk.f32.mxu0 %vm363_vm0, %v346_v6  ;;  %1715 = vmatprep.mubr.msk.f32.mxu1 %vm363_vm0, %v348_v7  ;;  %v500_v6 = vld [vmem:[%s2344_s11 + $0x38] sm:$0xff]  ;;  %p2032_p9 = por %p2031_p11, %p2030_p3 }
  0x82   : > { %1716 = vmatmul.mubr.msk.f32.vlgmr.msra.gmra.mxu1 %vm363_vm0, %v349_v8 }
  0x83   : > { %1718 = vmatprep.mubr.msk.f32.mxu1 %vm363_vm0, %v350_v9  ;;  %p2033_p13 = pnand %p2032_p9, %p2026_p10 }
  0x84   : > { %1713 = vmatmul.mubr.msk.f32.gmra.mxu0 %vm363_vm0, %v347_v10 }
  0x86   : > { %1719 = vmatmul.mubr.msk.f32.gmra.mxu1 %vm363_vm0, %v351_v11 }
 0x140   : > { %v1711_v13 = vpop.f32.mrf.mxu0 }
 0x141   : > { %v460_v14 = vadd.f32 %v1711_v13, %v1591_v12 }
 0x142   : > { %v454_v15 = vpop.f32.mrf.mxu0  ;;  %v1717_v16 = vpop.f32.mrf.mxu1 }
 0x143   : > { %v455_v17 = vadd.f32 %v1591_v12, %v454_v15  ;;  %505 = vrot.lane.b32.xlu0 %v460_v14, %s2103_s3  ;;  %v480_v23 = vadd.f32 %v1717_v16, %v1591_v12 }
 0x144   : > { %v1714_v18 = vpop.f32.mrf.mxu0  ;;  %v474_v19 = vpop.f32.mrf.mxu1 }
 0x145   : > { %v470_v20 = vadd.f32 %v1714_v18, %v1591_v12  ;;  %1725 = vmatprep.mubr.msk.f32.mxu1 %vm363_vm0, %v455_v17  ;;  %v475_v21 = vadd.f32 %v1591_v12, %v474_v19 }
 0x146   : > { %v464_v22 = vpop.f32.mrf.mxu0  ;;  %v1720_v24 = vpop.f32.mrf.mxu1 }
 0x147   : > { %594 = vrot.lane.b32.xlu1 %v470_v20, %s2103_s3  ;;  %503 = vrot.lane.b32.xlu0 %v455_v17, %s2103_s3  ;;  %v465_v25 = vadd.f32 %v1591_v12, %v464_v22  ;;  %v2371_v26 = vadd.f32 %v1720_v24, %v1591_v12 }
 0x148   : > { %1739 = vmatprep.mubr.msk.f32.mxu0 %vm363_vm0, %v475_v21  ;;  %v484_v27 = vpop.f32.mrf.mxu1 }
 0x149   : > { %v2374_v28 = vadd.f32 %v1591_v12, %v484_v27 }
 0x14b   : > { %592 = vrot.lane.b32.xlu1 %v465_v25, %s2103_s3  ;;  %683 = vrot.lane.b32.xlu0 %v480_v23, %s2103_s3 }
 0x14f   : > { %681 = vrot.lane.b32.xlu1 %v475_v21, %s2103_s3  ;;  %772 = vrot.lane.b32.xlu0 %v2371_v26, %s2103_s3 }
 0x153   : > { %770 = vrot.lane.b32.xlu1 %v2374_v28, %s2103_s3  ;;  %930 = vrot.lane.b32.xlu0 %v455_v17, %s2104_s12 }
 0x157   : > { %932 = vrot.lane.b32.xlu1 %v460_v14, %s2104_s12  ;;  %1106 = vrot.lane.b32.xlu0 %v480_v23, %s2104_s12 }
 0x15b   : > { %1019 = vrot.lane.b32.xlu1 %v470_v20, %s2104_s12 }
 0x15f   : > { %1104 = vrot.lane.b32.xlu1 %v475_v21, %s2104_s12 }
 0x163   : > { %1017 = vrot.lane.b32.xlu1 %v465_v25, %s2104_s12 }
 0x1b5   : > { %v506_v29 = vpop.permute.xlu0 %505 }
 0x1b6   : > { %1721 = vmatprep.subr.msk.mxu1 %vm363_vm0, %v506_v29 }
 0x1b7   : > { %1722 = vmatpush3.xpose.msk.msra.mxu1 %vm363_vm0, %v506_v29 }
 0x1b9   : > { %v595_v30 = vpop.permute.xlu1 %594  ;;  %v504_v31 = vpop.permute.xlu0 %503 }
 0x1ba   : > { %1723 = vmatprep.subr.msk.mxu1 %vm363_vm0, %v504_v31 }
 0x1bb   : > { %1724 = vmatpush3.xpose.msk.msra.mxu1 %vm363_vm0, %v504_v31 }
 0x1bc   : > { %1728 = vmatprep.subr.msk.mxu1 %vm363_vm0, %v595_v30 }
 0x1bd   : > { %v593_v32 = vpop.permute.xlu1 %592  ;;  %v684_v33 = vpop.permute.xlu0 %683 }
 0x1be   : > { %1726 = vmatmul.mubr.msk.f32.vlgmr.msra.gmra.mxu1 %vm363_vm0, %v460_v14  ;;  %1735 = vmatprep.subr.msk.mxu0 %vm363_vm0, %v684_v33 }
 0x1bf   : > { %1729 = vmatpush3.xpose.msk.msra.mxu1 %vm363_vm0, %v595_v30  ;;  %1732 = vmatprep.mubr.msk.f32.mxu1 %vm363_vm0, %v465_v25 }
 0x1c0   : > { %1736 = vmatpush3.xpose.msk.msra.mxu0 %vm363_vm0, %v684_v33  ;;  %1730 = vmatprep.subr.msk.mxu1 %vm363_vm0, %v593_v32 }
 0x1c1   : > { %v682_v34 = vpop.permute.xlu1 %681  ;;  %v773_v35 = vpop.permute.xlu0 %772 }
 0x1c2   : > { %1737 = vmatprep.subr.msk.mxu0 %vm363_vm0, %v682_v34 }
 0x1c3   : > { %1731 = vmatpush3.xpose.msk.msra.mxu1 %vm363_vm0, %v593_v32 }
 0x1c4   : > { %1738 = vmatpush3.xpose.msk.msra.mxu0 %vm363_vm0, %v682_v34  ;;  %1742 = vmatprep.subr.msk.mxu1 %vm363_vm0, %v773_v35 }
 0x1c5   : > { %v771_v36 = vpop.permute.xlu1 %770  ;;  %v931_v37 = vpop.permute.xlu0 %930 }
 0x1c6   : > { %1733 = vmatmul.mubr.msk.f32.vlgmr.msra.gmra.mxu1 %vm363_vm0, %v470_v20 }
 0x1c7   : > { %1740 = vmatmul.mubr.msk.f32.vlgmr.msra.gmra.mxu0 %vm363_vm0, %v480_v23  ;;  %1743 = vmatpush3.xpose.msk.msra.mxu1 %vm363_vm0, %v773_v35 }
 0x1c8   : > { %1746 = vmatprep.mubr.msk.f32.mxu1 %vm363_vm0, %v2374_v28  ;;  %1744 = vmatprep.subr.msk.mxu1 %vm363_vm0, %v771_v36 }
 0x1c9   : > { %v933_v38 = vpop.permute.xlu1 %932  ;;  %v2405_v40 = vpop.permute.xlu0 %1106 }
 0x1ca   : > { %1749 = vmatprep.subr.mxu0 %v933_v38 }
 0x1cb   : > { %1745 = vmatpush3.xpose.msk.msra.mxu1 %vm363_vm0, %v771_v36  ;;  %1750 = vmatpush3.msra.mxu0 %v933_v38 }
 0x1cc   : > { %1751 = vmatprep.subr.mxu0 %v931_v37 }
 0x1cd   : > { %v1020_v39 = vpop.permute.xlu1 %1019  ;;  %1752 = vmatpush3.msra.mxu0 %v931_v37 }
 0x1ce   : > { %1747 = vmatmul.mubr.msk.f32.vlgmr.msra.gmra.mxu1 %vm363_vm0, %v2371_v26  ;;  %1756 = vmatprep.subr.mxu1 %v1020_v39 }
 0x1cf   : > { %1763 = vmatprep.subr.mxu0 %v2405_v40  ;;  %1757 = vmatpush3.msra.mxu1 %v1020_v39 }
 0x1d1   : > { %v2410_v41 = vpop.permute.xlu1 %1104 }
 0x1d5   : > { %v1018_v42 = vpop.permute.xlu1 %1017 }
 0x1d6   : > { %1758 = vmatprep.subr.mxu1 %v1018_v42 }
 0x1d7   : > { %1759 = vmatpush3.msra.mxu1 %v1018_v42 }
 0x27e   : > { %v1727_v44 = vpop.f32.mrf.mxu1 }
 0x27f   : > { %v587_v45 = vadd.f32 %v1727_v44, %v494_v43 }
 0x280   : > { %v581_v48 = vpop.f32.mrf.mxu1 }
 0x281   : > { %v861_v46 = vsel %vm857_vm1, %v587_v45, -inf  ;;  %v582_v55 = vadd.f32 %v581_v48, %v493_v49 }
 0x282   : > { %862 = vmax.xlane.f32.xlu1 %v861_v46 }
 0x283   : > { %v858_v63 = vsel %vm857_vm1, %v582_v55, -inf }
 0x286   : > { %v1734_v52 = vpop.f32.mrf.mxu1 }
 0x287   : > { %v1741_v50 = vpop.f32.mrf.mxu0  ;;  %v676_v61 = vadd.f32 %v1734_v52, %v496_v58 }
 0x288   : > { %v765_v53 = vadd.f32 %v1741_v50, %v498_v47  ;;  %v670_v59 = vpop.f32.mrf.mxu1 }
 0x289   : > { %v759_v54 = vpop.f32.mrf.mxu0  ;;  %v671_v4 = vadd.f32 %v670_v59, %v495_v1  ;;  %v867_v5 = vsel %vm857_vm1, %v676_v61, -inf }
 0x28a   : > { %v760_v56 = vadd.f32 %v759_v54, %v497_v51  ;;  %v873_v57 = vsel %vm857_vm1, %v765_v53, -inf  ;;  %v1296_v54 = vld [vmem:[#allocation7 + $0x10] sm:$0xff] }
 0x28b   : > { %874 = vmax.xlane.f32.xlu0 %v873_v57  ;;  %v864_v9 = vsel %vm857_vm1, %v671_v4, -inf }
 0x28c   : > { %v870_v60 = vsel %vm857_vm1, %v760_v56, -inf }
 0x28d   : > { %871 = vmax.xlane.f32.xlu1 %v870_v60 }
 0x28e   : > { %v1748_v62 = vpop.f32.mrf.mxu1 }
 0x28f   : > { %859 = vmax.xlane.f32.xlu0 %v858_v63  ;;  %v854_v8 = vadd.f32 %v1748_v62, %v500_v6 }
 0x290   : > { %v848_v2 = vpop.f32.mrf.mxu1 }
 0x291   : > { %v849_v3 = vadd.f32 %v848_v2, %v499_v0  ;;  %v879_v10 = vsel %vm857_vm1, %v854_v8, -inf }
 0x293   : > { %868 = vmax.xlane.f32.xlu0 %v867_v5  ;;  %v876_v7 = vsel %vm857_vm1, %v849_v3, -inf }
 0x294   : > { %877 = vmax.xlane.f32.xlu1 %v876_v7 }
 0x297   : > { %865 = vmax.xlane.f32.xlu0 %v864_v9 }
 0x29b   : > { %880 = vmax.xlane.f32.xlu0 %v879_v10 }
 0x2a5   : > { %1191 = vrot.lane.b32.xlu1 %v2374_v28, %s2104_s12 }
 0x2b1   : > { %1193 = vrot.lane.b32.xlu0 %v2371_v26, %s2104_s12 }
 0x30b   : > { %v863_v11 = vpop.xlane.xlu1 %862 }
 0x30c   : > { %v883_v12 = vsub.f32 %v587_v45, %v863_v11 }
 0x30e   : > { %v892_v13 = vmul.f32 1.442695, %v883_v12 }
 0x310   : > { %1883 = vpow2.f32 %v892_v13 }
 0x314   : > { %v875_v14 = vpop.xlane.xlu0 %874 }
 0x315   : > { %v887_v18 = vsub.f32 %v765_v53, %v875_v14  ;;  %v1297_v53 = vld [vmem:[#allocation7 + $0x18] sm:$0xff] }
 0x316   : > { %v872_v15 = vpop.xlane.xlu1 %871 }
 0x317   : > { %v886_v16 = vsub.f32 %v760_v56, %v872_v15  ;;  %v900_v24 = vmul.f32 1.442695, %v887_v18  ;;  %v1294_v56 = vld [vmem:[#allocation7] sm:$0xff] }
 0x318   : > { %v860_v17 = vpop.xlane.xlu0 %859 }
 0x319   : > { %v898_v19 = vmul.f32 1.442695, %v886_v16  ;;  %v882_v20 = vsub.f32 %v582_v55, %v860_v17  ;;  %v1295_v55 = vld [vmem:[#allocation7 + $0x8] sm:$0xff] }
 0x31b   : > { %1885 = vpow2.f32 %v898_v19  ;;  %v890_v21 = vmul.f32 1.442695, %v882_v20 }
 0x31c   : > { %v869_v22 = vpop.xlane.xlu0 %868 }
 0x31d   : > { %v1884_v23 = vpop.eup %1883  ;;  %1887 = vpow2.f32 %v890_v21  ;;  %v878_v25 = vpop.xlane.xlu1 %877  ;;  %v885_v27 = vsub.f32 %v676_v61, %v869_v22 }
 0x31e   : > { %v888_v26 = vsub.f32 %v849_v3, %v878_v25  ;;  %v909_v28 = vsel %vm857_vm1, %v1884_v23, 0.0  ;;  %1889 = vpow2.f32 %v900_v24  ;;  %v1624_v25 = vld [vmem:[%s2524_s4] ss:$0 sm:$0xff] }
 0x31f   : > { %910 = vadd.xlane.f32.xlu1 %v909_v28  ;;  %v896_v32 = vmul.f32 1.442695, %v885_v27 }
 0x320   : > { %v902_v29 = vmul.f32 1.442695, %v888_v26  ;;  %v866_v30 = vpop.xlane.xlu0 %865 }
 0x321   : > { %v884_v31 = vsub.f32 %v671_v4, %v866_v30 }
 0x322   : > { %1891 = vpow2.f32 %v902_v29 }
 0x323   : > { %v894_v33 = vmul.f32 1.442695, %v884_v31 }
 0x324   : > { %v881_v34 = vpop.xlane.xlu0 %880 }
 0x325   : > { %1893 = vpow2.f32 %v894_v33  ;;  %v889_v35 = vsub.f32 %v854_v8, %v881_v34 }
 0x326   : > { %1895 = vpow2.f32 %v896_v32 }
 0x327   : > { %v904_v36 = vmul.f32 1.442695, %v889_v35 }
 0x328   : > { %v1886_v37 = vpop.eup %1885  ;;  %v1194_v38 = vpop.permute.xlu0 %1193 }
 0x329   : > { %1897 = vpow2.f32 %v904_v36  ;;  %1770 = vmatprep.subr.mxu1 %v1194_v38  ;;  %v918_v39 = vsel %vm857_vm1, %v1886_v37, 0.0 }
 0x32a   : > { %v1888_v42 = vpop.eup %1887  ;;  %919 = vadd.xlane.f32.xlu1 %v918_v39 }
 0x32b   : > { %1753 = vmatprep.mubr.msk.f32.mxu0 %vm857_vm1, %v1888_v42  ;;  %v906_v43 = vsel %vm857_vm1, %v1888_v42, 0.0  ;;  %v1890_v44 = vpop.eup %1889 }
 0x32c   : > { %1754 = vmatmul.mubr.msk.f32.vlgmr.msra.gmra.mxu0 %vm857_vm1, %v1884_v23  ;;  %907 = vadd.xlane.f32.xlu0 %v906_v43  ;;  %v921_v51 = vsel %vm857_vm1, %v1890_v44, 0.0 }
 0x32d   : > { %1764 = vmatpush3.msra.mxu0 %v2405_v40  ;;  %1767 = vmatprep.mubr.msk.f32.mxu0 %vm857_vm1, %v1886_v37  ;;  %v1192_v40 = vpop.permute.xlu1 %1191 }
 0x32e   : > { %1765 = vmatprep.subr.mxu0 %v2410_v41 }
 0x32f   : > { %v1892_v45 = vpop.eup %1891  ;;  %1766 = vmatpush3.msra.mxu0 %v2410_v41 }
 0x330   : > { %1768 = vmatmul.mubr.msk.f32.vlgmr.msra.gmra.mxu0 %vm857_vm1, %v1890_v44  ;;  %v924_v46 = vsel %vm857_vm1, %v1892_v45, 0.0  ;;  %1777 = vmatprep.subr.mxu0 %v1297_v53 }
 0x331   : > { %925 = vadd.xlane.f32.xlu1 %v924_v46  ;;  %1778 = vmatpush3.msra.mxu0 %v1297_v53 }
 0x332   : > { %v1894_v47 = vpop.eup %1893  ;;  %1779 = vmatprep.subr.mxu0 %v1296_v54 }
 0x333   : > { %v1896_v48 = vpop.eup %1895  ;;  %1760 = vmatprep.mubr.msk.f32.mxu1 %vm857_vm1, %v1894_v47  ;;  %v912_v49 = vsel %vm857_vm1, %v1894_v47, 0.0  ;;  %1780 = vmatpush3.msra.mxu0 %v1296_v54 }
 0x334   : > { %1761 = vmatmul.mubr.msk.f32.vlgmr.msra.gmra.mxu1 %vm857_vm1, %v1896_v48  ;;  %913 = vadd.xlane.f32.xlu0 %v912_v49  ;;  %v915_v41 = vsel %vm857_vm1, %v1896_v48, 0.0 }
 0x335   : > { %1771 = vmatpush3.msra.mxu1 %v1194_v38  ;;  %1774 = vmatprep.mubr.msk.f32.mxu1 %vm857_vm1, %v1892_v45 }
 0x336   : > { %v1898_v50 = vpop.eup %1897  ;;  %1772 = vmatprep.subr.mxu1 %v1192_v40  ;;  %1781 = vmatprep.subr.mxu0 %v1295_v55 }
 0x337   : > { %1773 = vmatpush3.msra.mxu1 %v1192_v40  ;;  %v927_v52 = vsel %vm857_vm1, %v1898_v50, 0.0  ;;  %1782 = vmatpush3.msra.mxu0 %v1295_v55 }
 0x338   : > { %916 = vadd.xlane.f32.xlu0 %v915_v41  ;;  %1775 = vmatmul.mubr.msk.f32.vlgmr.msra.gmra.mxu1 %vm857_vm1, %v1898_v50 }
 0x339   : > { %1783 = vmatprep.subr.mxu0 %v1294_v56 }
 0x33a   : > { %1784 = vmatpush3.msra.mxu0 %v1294_v56 }
 0x33c   : > { %922 = vadd.xlane.f32.xlu0 %v921_v51 }
 0x340   : > { %928 = vadd.xlane.f32.xlu0 %v927_v52 }
 0x3a8   : > { %v911_v59 = vpop.xlane.xlu1 %910 }
 0x3b3   : > { %v920_v61 = vpop.xlane.xlu1 %919 }
 0x3b5   : > { %v908_v57 = vpop.xlane.xlu0 %907 }
 0x3b6   : > { %1899 = vrcp.f32 %v908_v57 }
 0x3b7   : > { %1901 = vrcp.f32 %v911_v59 }
 0x3ba   : > { %v926_v63 = vpop.xlane.xlu1 %925 }
 0x3bd   : > { %v914_v58 = vpop.xlane.xlu0 %913 }
 0x3be   : > { %1903 = vrcp.f32 %v914_v58 }
 0x3c1   : > { %v917_v60 = vpop.xlane.xlu0 %916 }
 0x3c2   : > { %1905 = vrcp.f32 %v917_v60 }
 0x3c3   : > { %1907 = vrcp.f32 %v920_v61  ;;  %v1900_v1 = vpop.eup %1899 }
 0x3c4   : > { %v1902_v3 = vpop.eup %1901 }
 0x3c5   : > { %v923_v62 = vpop.xlane.xlu0 %922 }
 0x3c6   : > { %1909 = vrcp.f32 %v923_v62 }
 0x3c7   : > { %1911 = vrcp.f32 %v926_v63 }
 0x3c9   : > { %v929_v4 = vpop.xlane.xlu0 %928 }
 0x3ca   : > { %1913 = vrcp.f32 %v929_v4 }
 0x3cb   : > { %v1904_v9 = vpop.eup %1903 }
 0x3cf   : > { %v1906_v12 = vpop.eup %1905 }
 0x3d0   : > { %v1908_v14 = vpop.eup %1907 }
 0x3d3   : > { %v1910_v19 = vpop.eup %1909 }
 0x3d4   : > { %v1912_v20 = vpop.eup %1911 }
 0x3d7   : > { %v1914_v23 = vpop.eup %1913 }
 0x3ec   : > { %v1755_v0 = vpop.f32.mrf.mxu0 }
 0x3ed   : > { %v1287_v6 = vmul.f32 %v1902_v3, %v1755_v0 }
 0x3ee   : > { %v1008_v2 = vpop.f32.mrf.mxu0 }
 0x3ef   : > { %v1286_v5 = vmul.f32 %v1900_v1, %v1008_v2 }
 0x3f0   : > { %v1769_v7 = vpop.f32.mrf.mxu0 }
 0x3f1   : > { %1785 = vmatprep.mubr.msk.f32.mxu0 %vm363_vm0, %v1286_v5  ;;  %v1291_v21 = vmul.f32 %v1910_v19, %v1769_v7 }
 0x3f2   : > { %1786 = vmatmul.mubr.msk.f32.vlgmr.msra.gmra.mxu0 %vm363_vm0, %v1287_v6  ;;  %v1182_v10 = vpop.f32.mrf.mxu0 }
 0x3f3   : > { %v1290_v17 = vmul.f32 %v1908_v14, %v1182_v10 }
 0x3f4   : > { %v1762_v8 = vpop.f32.mrf.mxu1 }
 0x3f5   : > { %v1289_v15 = vmul.f32 %v1906_v12, %v1762_v8 }
 0x3f6   : > { %v1095_v11 = vpop.f32.mrf.mxu1 }
 0x3f7   : > { %v1288_v13 = vmul.f32 %v1904_v9, %v1095_v11 }
 0x3f8   : > { %v1776_v16 = vpop.f32.mrf.mxu1 }
 0x3f9   : > { %1788 = vmatprep.mubr.msk.f32.mxu0 %vm363_vm0, %v1288_v13  ;;  %v1293_v24 = vmul.f32 %v1914_v23, %v1776_v16 }
 0x3fa   : > { %v1269_v18 = vpop.f32.mrf.mxu1  ;;  %1789 = vmatmul.mubr.msk.f32.gmra.mxu0 %vm363_vm0, %v1289_v15 }
 0x3fb   : > { %1791 = vmatprep.mubr.msk.f32.mxu0 %vm363_vm0, %v1290_v17  ;;  %v1292_v22 = vmul.f32 %v1912_v20, %v1269_v18 }
 0x3fe   : > { %1792 = vmatmul.mubr.msk.f32.gmra.mxu0 %vm363_vm0, %v1291_v21 }
 0x3ff   : > { %1794 = vmatprep.mubr.msk.f32.mxu0 %vm363_vm0, %v1292_v22 }
 0x402   : > { %1795 = vmatmul.mubr.msk.f32.gmra.mxu0 %vm363_vm0, %v1293_v24 }
 0x4b2   : > { %v1787_v27 = vpop.f32.mrf.mxu0 }
 0x4b3   : > { %v1401_v26 = vadd.f32 %v1787_v27, %v1624_v25 }
 0x4b4   : > { %v1395_v28 = vpop.f32.mrf.mxu0 }
 0x4b5   : > { %1435 = vst.msk [vmem:[%s340_s10 + $0x8] sm:$0xff] %vm363_vm0, %v1401_v26  ;;  %v1396_v29 = vadd.f32 %v1624_v25, %v1395_v28 }
 0x4b7   : > { %1434 = vst.msk [vmem:[%s340_s10] sm:$0xff] %vm363_vm0, %v1396_v29 }
 0x4ba   : > { %v1790_v30 = vpop.f32.mrf.mxu0 }
 0x4bb   : > { %v1411_v31 = vadd.f32 %v1790_v30, %v1624_v25 }
 0x4bc   : > { %v1405_v32 = vpop.f32.mrf.mxu0 }
 0x4bd   : > { %1437 = vst.msk [vmem:[%s340_s10 + $0x18] sm:$0xff] %vm363_vm0, %v1411_v31  ;;  %v1406_v33 = vadd.f32 %v1624_v25, %v1405_v32 }
 0x4be   : > { %v1793_v34 = vpop.f32.mrf.mxu0 }
 0x4bf   : > { %1436 = vst.msk [vmem:[%s340_s10 + $0x10] sm:$0xff] %vm363_vm0, %v1406_v33  ;;  %v1421_v35 = vadd.f32 %v1793_v34, %v1624_v25 }
 0x4c0   : > { %v1415_v36 = vpop.f32.mrf.mxu0 }
 0x4c1   : > { %1439 = vst.msk [vmem:[%s340_s10 + $0x28] sm:$0xff] %vm363_vm0, %v1421_v35  ;;  %v1416_v37 = vadd.f32 %v1624_v25, %v1415_v36 }
 0x4c2   : > { %v1796_v38 = vpop.f32.mrf.mxu0 }
 0x4c3   : > { %1438 = vst.msk [vmem:[%s340_s10 + $0x20] sm:$0xff] %vm363_vm0, %v1416_v37  ;;  %v1431_v39 = vadd.f32 %v1796_v38, %v1624_v25 }
 0x4c4   : > { %v1425_v42 = vpop.f32.mrf.mxu0 }
 0x4c5   : > { %1441 = vst.msk [vmem:[%s340_s10 + $0x38] sm:$0xff] %vm363_vm0, %v1431_v39  ;;  %v1426_v43 = vadd.f32 %v1624_v25, %v1425_v42 }
 0x4c7   : > { %1440 = vst.msk [vmem:[%s340_s10 + $0x30] sm:$0xff] %vm363_vm0, %v1426_v43 }
 0x4c8   : > { %2036 = shalt.err (!%p2033_p13)
}
 0x4c9   : > { %s2037_s18 = scalar_lea.hbm %s2473_s15, 1024  ;;  %s2041_s27 = scalar_lea.hbm %s2526_s6, 2048 }
 0x4ca   : > { %p2038_p1 = scmp.ne.s32.totalorder %s2473_s15, %s2037_s18  ;;  %p2042_p7 = scmp.lt.s32.totalorder %s2473_s15, %s2526_s6 }
 0x4cb   : > { %p2043_p2 = scmp.lt.s32.totalorder %s2041_s27, %s2037_s18 }
 0x4cc   : > { %p2039_p4 = pnand %p2038_p1, %p2556_p12 }
 0x4cd   : > { %p2044_p8 = por %p2043_p2, %p2042_p7 }
 0x4ce   : > { %p2040_p5 = pneg %p2039_p4 }
 0x4d0   : > { %p2045_p6 = pnand %p2044_p8, %p2040_p5 }
 0x4d2   : > { %2048 = shalt.err (!%p2045_p6)
}
 0x4d3   : > { %s2106_s12 = smov 128   ;;  %s2107_s13 = smov 8  }
 0x4d4   : > { %1817 = dma.vmem_to_hbm [thread:$0]  (%p2556_p12), %s2475_s20, 1024, %s2473_s15, %s1443_s25, %s2106_s12, %s2106_s12, %s2107_s13  }
 0x4d5 PF: > { %s1472_s16 = sand.u32 1, %s2083_s21   ;;  %p2557_p0 = scmp.ne.s32.totalorder %s2541_s28, 0 }
 0x4d6   : > { %p2558_p10 = scmp.ge.s32.totalorder %s2095_s24, 2  ;;  %s1473_s10 = scalar_lea.sflag [#allocation4], %s1472_s16 }
 0x4d8   : > { %p1834_p3 = pnand %p2558_p10, %p2557_p0 }
 0x4da   : > { %p1835_p11 = pneg %p1834_p3 }
 0x4dc   : > { %2078 = dma.done.wait (%p1835_p11), %s1473_s10, 1024  }
 0x4dd   : > { %2080 = vsyncadd (%p1835_p11), %s1473_s10, 4294966272  ;;  %s2559_s9 = sld [smem:[#allocation15_spill]]  ;;  %p23_p9 = scmp.ge.s32.totalorder %s2221_s19, 4  }
 0x4de   : > { %s2560_s23 = sld [smem:[#allocation16_spill]]  ;;  %s2561_s21 = smov %s2087_s22 }
 0x4df   : > { %s2563_s24 = smov %s2221_s19  ;;  %25 = sbr.rel (!%p23_p9) target bundleno = 12 (0xc), region = 110 }
 0x4e3   : > { %s2562_s22 = smov %s2559_s9 }
 0x4e4   :  { %1478 = vsyncpa [#allocation3], 1 }
 0x4e5   :  { %1480 = vsyncpa [#allocation3 + $0x1], 1 }
 0x4e6   :  { %1481 = vsyncpa [#allocation6], 1 }
 0x4e7   :  { %1482 = vsyncpa [#allocation9], 1 }
 0x4e8   :  { %1484 = vsyncpa [#allocation9 + $0x1], 1 }
 0x4e9   :  { %1485 = vsyncpa [#allocation4], 1 }
 0x4ea   :  { %1487 = vsyncpa [#allocation4 + $0x1], 1 }

</bundles_post_ra>
